<compile_context>
chip_gen: v7x
topology: tpu7x:2x2x1
jax: 0.10.0
libtpu: 0.0.40
codegen_flags: <defaults>
</compile_context>

<pallas_src>
import jax
import jax.numpy as jnp
from jax.experimental import pallas as pl
from jax.experimental.pallas import tpu as pltpu


def _make_mlp_kernel(num_layers: int, softmax: bool, use_bf16: bool, batched: bool):
    """Builds a fused MLP kernel for `num_layers` Linear layers.

    batched=False: x_ref is (B, in), out_ref is (B, out)           (no grid)
    batched=True : x_ref is (1, B, in), out_ref is (1, B, out)      (grid over N)
    """
    matmul_dtype = jnp.bfloat16 if use_bf16 else jnp.float32

    def kernel(*refs):
        # refs = (x_ref, w0, b0, w1, b1, ..., w_{L-1}, b_{L-1}, out_ref)
        x_ref = refs[0]
        out_ref = refs[-1]
        param_refs = refs[1:-1]

        x = x_ref[0] if batched else x_ref[...]
        h = x if x.dtype == jnp.float32 else x.astype(jnp.float32)

        for i in range(num_layers):
            w = param_refs[2 * i][...]        # (in_i, out_i), pre-transposed
            b = param_refs[2 * i + 1][...]    # (1, out_i), f32
            if i > 0:
                h = jnp.maximum(h, 0.0)       # ReLU kept in f32 (v5e VPU has no bf16)
            lhs = h if h.dtype == matmul_dtype else h.astype(matmul_dtype)
            h = jnp.dot(lhs, w, preferred_element_type=jnp.float32) + b

        if softmax:
            # torch.softmax(x, 0): softmax across the batch (axis 0) of this
            # forward pass.  When batched over a grid, each grid element is an
            # independent forward pass, so a per-tile softmax is correct.
            m = jnp.max(h, axis=0, keepdims=True)
            e = jnp.exp(h - m)
            denom = jnp.sum(e, axis=0, keepdims=True)
            h = e * pl.reciprocal(denom, approx=True)   # EUP vrcp, free slot

        res = h if h.dtype == out_ref.dtype else h.astype(out_ref.dtype)
        if batched:
            out_ref[0] = res
        else:
            out_ref[...] = res

    return kernel


def make_nn_forward(weights, biases, *, softmax=False, use_bf16=False):
    """Builds a jitted forward fn matching NN.forward.

    Args:
      weights: list of PyTorch-style Linear weights, each (out_i, in_i).
      biases:  list of biases, each (out_i,).
      softmax: apply softmax over axis 0 (batch) at the end.
      use_bf16: feed the MXU bf16 operands (f32 accumulate). Looser numerics.

    Returned fn accepts:
      x of shape (B, in)        -> (B, out)        single fused pallas_call
      x of shape (N, B, in)     -> (N, B, out)     N independent forward passes
                                                   in ONE pallas_call, grid=(N,)
    """
    num_layers = len(weights)
    assert num_layers == len(biases) and num_layers >= 1

    w_dtype = jnp.bfloat16 if use_bf16 else jnp.float32
    # Hoisted, done once at construction time: transpose to (in, out), reshape
    # bias to (1, out), optional bf16 cast of weights.
    params = []
    for w, b in zip(weights, biases):
        params.append(jnp.asarray(w, jnp.float32).T.astype(w_dtype))   # (in_i, out_i)
        params.append(jnp.asarray(b, jnp.float32).reshape(1, -1))      # (1, out_i)
    out_dim = int(weights[-1].shape[0])

    @jax.jit
    def forward(x):
        out_dtype = x.dtype

        if x.ndim == 2:
            batch, _ = x.shape
            kernel = _make_mlp_kernel(num_layers, softmax, use_bf16, batched=False)
            return pl.pallas_call(
                kernel,
                out_shape=jax.ShapeDtypeStruct((batch, out_dim), out_dtype),
                in_specs=[pl.BlockSpec(memory_space=pltpu.VMEM)]
                + [pl.BlockSpec(memory_space=pltpu.VMEM) for _ in params],
                out_specs=pl.BlockSpec(memory_space=pltpu.VMEM),
            )(x, *params)

        assert x.ndim == 3, "x must be (B, in) or (N, B, in)"
        n, batch, in_dim = x.shape
        kernel = _make_mlp_kernel(num_layers, softmax, use_bf16, batched=True)
        param_specs = [pl.BlockSpec(p.shape, lambda i: (0, 0)) for p in params]
        return pl.pallas_call(
            kernel,
            out_shape=jax.ShapeDtypeStruct((n, batch, out_dim), out_dtype),
            grid=(n,),
            in_specs=[pl.BlockSpec((1, batch, in_dim), lambda i: (i, 0, 0))]
            + param_specs,
            out_specs=pl.BlockSpec((1, batch, out_dim), lambda i: (i, 0, 0)),
            compiler_params=pltpu.CompilerParams(
                dimension_semantics=("parallel",)),  # both TCs on v7x
        )(x, *params)

    return forward


def _init_linear(key, in_size, out_size):
    """Deterministic init mimicking torch.nn.Linear default (uniform +-1/sqrt(in))."""
    kw, kb = jax.random.split(key)
    bound = 1.0 / (in_size ** 0.5)
    w = jax.random.uniform(kw, (out_size, in_size), jnp.float32, -bound, bound)
    b = jax.random.uniform(kb, (out_size,), jnp.float32, -bound, bound)
    return w, b


def _reference_forward(x, weights, biases, softmax):
    """Pure-JAX reference mirroring the PyTorch forward exactly."""
    h = x @ weights[0].T + biases[0]
    for i in range(1, len(weights)):
        h = jnp.maximum(h, 0.0)
        h = h @ weights[i].T + biases[i]
    if softmax:
        h = jax.nn.softmax(h, axis=0)
    return h


if __name__ == "__main__":
    # NN(inSize=32, outSize=16, layers=[64, 48], softmax=...)
    batch, in_size, out_size = 8, 32, 16
    hidden_layers = [64, 48]

    key = jax.random.PRNGKey(0)
    key, kx, kxs = jax.random.split(key, 3)
    x = jax.random.normal(kx, (batch, in_size), jnp.float32)

    sizes = [in_size] + hidden_layers + [out_size]
    weights, biases = [], []
    for i in range(len(sizes) - 1):
        key, kl = jax.random.split(key)
        w, b = _init_linear(kl, sizes[i], sizes[i + 1])
        weights.append(w)
        biases.append(b)

    # --- single forward pass, f32 MXU path ---
    for use_softmax in (False, True):
        fwd = make_nn_forward(weights, biases, softmax=use_softmax)
        out = jax.block_until_ready(fwd(x))
        ref = _reference_forward(x, weights, biases, use_softmax)
        assert out.shape == (batch, out_size)
        # approx reciprocal in the softmax epilogue -> slightly looser tolerance
        tol = 1e-3 if use_softmax else 1e-5
        assert jnp.allclose(out, ref, atol=tol, rtol=tol), (
            f"mismatch (softmax={use_softmax}): "
            f"max err {jnp.max(jnp.abs(out - ref))}"
        )

    # --- N independent forward passes fused into ONE pallas_call (grid) ---
    N = 4
    xs = jax.random.normal(kxs, (N, batch, in_size), jnp.float32)
    fwd_sm = make_nn_forward(weights, biases, softmax=True)
    outs = jax.block_until_ready(fwd_sm(xs))
    refs = jnp.stack(
        [_reference_forward(xs[i], weights, biases, True) for i in range(N)])
    assert outs.shape == (N, batch, out_size)
    assert jnp.allclose(outs, refs, atol=1e-3, rtol=1e-3), (
        f"batched mismatch: max err {jnp.max(jnp.abs(outs - refs))}"
    )

    # --- bf16 MXU path (single-pass MXU), looser tolerance ---
    fwd_bf16 = make_nn_forward(weights, biases, softmax=False, use_bf16=True)
    out_bf = jax.block_until_ready(fwd_bf16(x))
    ref = _reference_forward(x, weights, biases, False)
    assert jnp.allclose(out_bf, ref, atol=5e-2, rtol=5e-2), (
        f"bf16 mismatch: max err {jnp.max(jnp.abs(out_bf - ref))}"
    )

    print("KERNEL_OK")
</pallas_src>

<mosaic_0001>
module attributes {stable_mosaic.version = 11 : i64} {
  func.func @kernel(%arg0: memref<8x32xf32, #tpu.memory_space<vmem>>, %arg1: memref<32x64xf32, #tpu.memory_space<vmem>>, %arg2: memref<1x64xf32, #tpu.memory_space<vmem>>, %arg3: memref<64x48xf32, #tpu.memory_space<vmem>>, %arg4: memref<1x48xf32, #tpu.memory_space<vmem>>, %arg5: memref<48x16xf32, #tpu.memory_space<vmem>>, %arg6: memref<1x16xf32, #tpu.memory_space<vmem>>, %arg7: memref<8x16xf32, #tpu.memory_space<vmem>>) attributes {dimension_semantics = [], scalar_prefetch = 0 : i64, scratch_operands = 0 : i64, tpu.core_type = #tpu.core_type<tc>} {
    %c0 = arith.constant 0 : index
    %c0_0 = arith.constant 0 : index
    %0 = vector.load %arg0[%c0, %c0_0] : memref<8x32xf32, #tpu.memory_space<vmem>>, vector<8x32xf32>
    %c0_1 = arith.constant 0 : index
    %c0_2 = arith.constant 0 : index
    %1 = vector.load %arg1[%c0_1, %c0_2] : memref<32x64xf32, #tpu.memory_space<vmem>>, vector<32x64xf32>
    %c0_3 = arith.constant 0 : index
    %c0_4 = arith.constant 0 : index
    %2 = vector.load %arg2[%c0_3, %c0_4] : memref<1x64xf32, #tpu.memory_space<vmem>>, vector<1x64xf32>
    %cst = arith.constant dense<0.000000e+00> : vector<8x64xf32>
    %3 = tpu.matmul %0, %1, %cst {dimension_numbers = #tpu.dot_dimension_numbers<[1], [0], [0], [1], [0, 0, 1, 1], [], []>} : vector<8x32xf32>, vector<32x64xf32>, vector<8x64xf32> -> vector<8x64xf32>
    %4 = vector.broadcast %2 : vector<1x64xf32> to vector<8x64xf32>
    %5 = arith.addf %3, %4 : vector<8x64xf32>
    %c0_5 = arith.constant 0 : index
    %c0_6 = arith.constant 0 : index
    %6 = vector.load %arg3[%c0_5, %c0_6] : memref<64x48xf32, #tpu.memory_space<vmem>>, vector<64x48xf32>
    %c0_7 = arith.constant 0 : index
    %c0_8 = arith.constant 0 : index
    %7 = vector.load %arg4[%c0_7, %c0_8] : memref<1x48xf32, #tpu.memory_space<vmem>>, vector<1x48xf32>
    %cst_9 = arith.constant 0.000000e+00 : f32
    %8 = vector.broadcast %cst_9 : f32 to vector<8x64xf32>
    %9 = arith.maximumf %5, %8 : vector<8x64xf32>
    %cst_10 = arith.constant dense<0.000000e+00> : vector<8x48xf32>
    %10 = tpu.matmul %9, %6, %cst_10 {dimension_numbers = #tpu.dot_dimension_numbers<[1], [0], [0], [1], [0, 0, 1, 1], [], []>} : vector<8x64xf32>, vector<64x48xf32>, vector<8x48xf32> -> vector<8x48xf32>
    %11 = vector.broadcast %7 : vector<1x48xf32> to vector<8x48xf32>
    %12 = arith.addf %10, %11 : vector<8x48xf32>
    %c0_11 = arith.constant 0 : index
    %c0_12 = arith.constant 0 : index
    %13 = vector.load %arg5[%c0_11, %c0_12] : memref<48x16xf32, #tpu.memory_space<vmem>>, vector<48x16xf32>
    %c0_13 = arith.constant 0 : index
    %c0_14 = arith.constant 0 : index
    %14 = vector.load %arg6[%c0_13, %c0_14] : memref<1x16xf32, #tpu.memory_space<vmem>>, vector<1x16xf32>
    %cst_15 = arith.constant 0.000000e+00 : f32
    %15 = vector.broadcast %cst_15 : f32 to vector<8x48xf32>
    %16 = arith.maximumf %12, %15 : vector<8x48xf32>
    %cst_16 = arith.constant dense<0.000000e+00> : vector<8x16xf32>
    %17 = tpu.matmul %16, %13, %cst_16 {dimension_numbers = #tpu.dot_dimension_numbers<[1], [0], [0], [1], [0, 0, 1, 1], [], []>} : vector<8x48xf32>, vector<48x16xf32>, vector<8x16xf32> -> vector<8x16xf32>
    %18 = vector.broadcast %14 : vector<1x16xf32> to vector<8x16xf32>
    %19 = arith.addf %17, %18 : vector<8x16xf32>
    %c0_17 = arith.constant 0 : index
    %c0_18 = arith.constant 0 : index
    %20 = vector.load %arg7[%c0_17, %c0_18] : memref<8x16xf32, #tpu.memory_space<vmem>>, vector<8x16xf32>
    tpu.vector_store %arg7[%c0_17, %c0_18], %19 {strides = array<i32>} : memref<8x16xf32, #tpu.memory_space<vmem>>, vector<8x16xf32>,
    return
  }
}

</mosaic_0001>

<bundles_post_ra>
// kernel: forward.1
= control target key start
LH: loop header
LB: loop body
LE: loop exit
PB: predicated region body
PF: predicated region fallthrough
CT: control target
= control target key end

     0   :  { %12 = vsyncpa [#allocation3], 0  ;;  %s721_s0 = inlined_call_operand.hbm [shape: f32[8,32], index: 0, kind: input, shape index: {}]   ;;  %s722_s1 = inlined_call_operand.hbm [shape: f32[32,64], index: 1, kind: input, shape index: {}]   ;;  %s723_s2 = inlined_call_operand.vmem [shape: f32[1,64], index: 2, kind: input, shape index: {}]   ;;  %s724_s3 = inlined_call_operand.hbm [shape: f32[64,48], index: 3, kind: input, shape index: {}]   ;;  %s725_s4 = inlined_call_operand.vmem [shape: f32[1,48], index: 4, kind: input, shape index: {}]   ;;  %s726_s5 = inlined_call_operand.hbm [shape: f32[48,16], index: 5, kind: input, shape index: {}]   ;;  %s727_s6 = inlined_call_operand.vmem [shape: f32[1,16], index: 6, kind: input, shape index: {}]   ;;  %s728_s7 = inlined_call_operand.hbm [shape: f32[8,16], index: 7, kind: output, shape index: {}]  }
   0x1   :  { %13 = vsyncpa [#allocation6], 0 }
   0x2   :  { %14 = vsyncpa [#allocation9], 0 }
   0x3   :  { %15 = vsyncpa [#allocation4], 0  ;;  %s590_s24 = smov [#allocation5]   ;;  %s472_s28 = scalar_lea.hbm %s722_s1, 512 }
   0x4   :  { %s31_s25 = sshll.u32 %s590_s24, 4  ;;  %p473_p0 = scmp.ne.s32.totalorder %s722_s1, %s472_s28  ;;  %s32_s25 = int_to_ptr.vmem [resolvable:$true] %s31_s25 }
   0x5   :  { %p476_p1 = scmp.lt.u32.totalorder %s472_s28, %s722_s1 }
   0x7   :  { %p478_p2 = pnand %p476_p1, %p473_p0 }
   0x9   :  { %481 = shalt.err (!%p478_p2)
}
   0xa   :  { %s482_s10 = scalar_lea.vmem %s32_s25, 512  ;;  %p487_p4 = scmp.lt.s32.totalorder %s32_s25, %s32_s25 }
   0xb   :  { %p483_p3 = scmp.ne.s32.totalorder %s32_s25, %s482_s10  ;;  %p488_p5 = scmp.lt.s32.totalorder %s482_s10, %s482_s10 }
   0xd   :  { %p489_p6 = por %p488_p5, %p487_p4 }
   0xf   :  { %p490_p7 = pnand %p489_p6, %p483_p3 }
  0x11   :  { %493 = shalt.err (!%p490_p7)
}
  0x12   :  { %s591_s11 = smov 128   ;;  %s592_s12 = smov 8  }
  0x13   :  { %37 = dma.hbm_to_vmem [thread:$0]  %s722_s1, 512, %s32_s25, [#allocation6], %s591_s11, %s591_s11, %s592_s12  }
  0x14   :  { %s593_s15 = smov [#allocation2]   ;;  %s594_s17 = smov [#allocation7]  }
  0x15   :  { %s22_s16 = sshll.u32 %s593_s15, 4  ;;  %s45_s18 = sshll.u32 %s594_s17, 4  ;;  %s23_s16 = int_to_ptr.vmem [resolvable:$true] %s22_s16  ;;  %s46_s18 = int_to_ptr.vmem [resolvable:$true] %s45_s18 }
  0x16   :  { %s494_s21 = scalar_lea.hbm %s721_s0, 128 }
  0x17   :  { %p495_p8 = scmp.ne.s32.totalorder %s721_s0, %s494_s21  ;;  %p498_p9 = scmp.lt.u32.totalorder %s494_s21, %s721_s0 }
  0x19   :  { %p500_p10 = pnand %p498_p9, %p495_p8 }
  0x1b   :  { %503 = shalt.err (!%p500_p10)
}
  0x1c   :  { %s504_s1 = scalar_lea.vmem %s23_s16, 128  ;;  %p509_p12 = scmp.lt.s32.totalorder %s23_s16, %s23_s16 }
  0x1d   :  { %p505_p11 = scmp.ne.s32.totalorder %s23_s16, %s504_s1  ;;  %p510_p13 = scmp.lt.s32.totalorder %s504_s1, %s504_s1 }
  0x1f   :  { %p511_p0 = por %p510_p13, %p509_p12 }
  0x21   :  { %p512_p1 = pnand %p511_p0, %p505_p11 }
  0x23   :  { %515 = shalt.err (!%p512_p1)
}
  0x24   :  { %25 = dma.hbm_to_vmem [thread:$0]  %s721_s0, 128, %s23_s16, [#allocation3]  }
  0x25   :  { %s516_s30 = scalar_lea.hbm %s724_s3, 1024 }
  0x26   :  { %p517_p2 = scmp.ne.s32.totalorder %s724_s3, %s516_s30  ;;  %p520_p3 = scmp.lt.u32.totalorder %s516_s30, %s724_s3 }
  0x28   :  { %p522_p4 = pnand %p520_p3, %p517_p2 }
  0x2a   :  { %525 = shalt.err (!%p522_p4)
}
  0x2b   :  { %s526_s14 = scalar_lea.vmem %s46_s18, 1024  ;;  %p531_p6 = scmp.lt.s32.totalorder %s46_s18, %s46_s18 }
  0x2c   :  { %p527_p5 = scmp.ne.s32.totalorder %s46_s18, %s526_s14  ;;  %p532_p7 = scmp.lt.s32.totalorder %s526_s14, %s526_s14 }
  0x2e   :  { %p533_p8 = por %p532_p7, %p531_p6 }
  0x30   :  { %p534_p9 = pnand %p533_p8, %p527_p5 }
  0x32   :  { %537 = shalt.err (!%p534_p9)
}
  0x33   :  { %51 = dma.hbm_to_vmem [thread:$0]  %s724_s3, 1024, %s46_s18, [#allocation6], %s591_s11, %s591_s11, %s592_s12  }
  0x34   :  { %s595_s16 = smov [#allocation8]   ;;  %s538_s21 = scalar_lea.hbm %s726_s5, 768 }
  0x35   :  { %s59_s17 = sshll.u32 %s595_s16, 4  ;;  %p539_p10 = scmp.ne.s32.totalorder %s726_s5, %s538_s21  ;;  %s60_s17 = int_to_ptr.vmem [resolvable:$true] %s59_s17 }
  0x36   :  { %p542_p11 = scmp.lt.u32.totalorder %s538_s21, %s726_s5 }
  0x38   :  { %p544_p12 = pnand %p542_p11, %p539_p10 }
  0x3a   :  { %547 = shalt.err (!%p544_p12)
}
  0x3b   :  { %s548_s1 = scalar_lea.vmem %s60_s17, 768  ;;  %p553_p0 = scmp.lt.s32.totalorder %s60_s17, %s60_s17 }
  0x3c   :  { %p549_p13 = scmp.ne.s32.totalorder %s60_s17, %s548_s1  ;;  %p554_p1 = scmp.lt.s32.totalorder %s548_s1, %s548_s1 }
  0x3e   :  { %p555_p2 = por %p554_p1, %p553_p0 }
  0x40   :  { %p556_p3 = pnand %p555_p2, %p549_p13 }
  0x42   :  { %559 = shalt.err (!%p556_p3)
}
  0x43   :  { %65 = dma.hbm_to_vmem [thread:$0]  %s726_s5, 768, %s60_s17, [#allocation9], %s591_s11, %s591_s11, %s592_s12  }
  0x44   :  { %582 = dma.done.wait [#allocation3], 128  }
  0x45   :  { %583 = vsyncadd [#allocation3], 4294967168 }
  0x46   :  { %584 = dma.done.wait [#allocation6], 1536  }
  0x47   :  { %585 = vsyncadd [#allocation6], 4294965760 }
  0x48   :  { %586 = dma.done.wait [#allocation9], 768  }
  0x49   :  { %587 = vsyncadd [#allocation9], 4294966528  ;;  %v596_v0 = vmov 0.0|0.0   ;;  %vm597_vm0 = vmmov 0   ;;  %v598_v1 = vmov 0.0   ;;  %v81_v2 = vld [vmem:[#allocation5] sm:$0xff] }
  0x4a   :  { %435 = vmatprep.subr.bf16.mxu0 %v596_v0  ;;  %398 = vmatprep.mubr.msk.f32.mxu0 %vm597_vm0, %v598_v1  ;;  %v82_v3 = vld [vmem:[#allocation5 + $0x8] sm:$0xff]  ;;  %v83_v4 = vld [vmem:[#allocation5 + $0x10] sm:$0xff]  ;;  %v84_v6 = vld [vmem:[#allocation5 + $0x18] sm:$0xff]  ;;  %vm92_vm1 = vcmask 261120   ;;  %vm182_vm2 = vcmask 523264   ;;  %vm270_vm3 = vcmask 392192  }
  0x4b   :  { %441 = vmatprep.subr.bf16.mxu1 %v596_v0  ;;  %417 = vmatprep.mubr.msk.f32.mxu1 %vm597_vm0, %v598_v1  ;;  %v436_v5 = vpack.c.bf16 %v82_v3, %v81_v2  ;;  %v166_v7 = vld [vmem:[#allocation7] sm:$0xff]  ;;  %v167_v8 = vld [vmem:[#allocation7 + $0x8] sm:$0xff]  ;;  %v168_v9 = vld [vmem:[#allocation7 + $0x10] sm:$0xff]  ;;  %v439_v11 = vpack.c.bf16 %v84_v6, %v83_v4  ;;  %s599_s28 = smov [#allocation10]   ;;  %vm344_vm4 = vcmask 130048  }
  0x4c   :  { %v169_v10 = vld [vmem:[#allocation7 + $0x18] sm:$0xff]  ;;  %v442_v12 = vpack.c.bf16 %v167_v8, %v166_v7  ;;  %v170_v14 = vld [vmem:[#allocation7 + $0x20] sm:$0xff]  ;;  %v171_v15 = vld [vmem:[#allocation7 + $0x28] sm:$0xff]  ;;  %s352_s29 = sshll.u32 %s599_s28, 4  ;;  %s353_s29 = int_to_ptr.vmem [resolvable:$true] %s352_s29 }
  0x4d   :  { %437 = vmatpush3.bf16.msra.mxu0 %v436_v5  ;;  %v445_v13 = vpack.c.bf16 %v169_v10, %v168_v9  ;;  %v80_v16 = vld [vmem:[#allocation2] sm:$0xff]  ;;  %v448_v17 = vpack.c.bf16 %v171_v15, %v170_v14  ;;  %v172_v18 = vld [vmem:[#allocation7 + $0x30] sm:$0xff]  ;;  %v256_v21 = vld [vmem:[#allocation8] sm:$0xff]  ;;  %s560_s30 = scalar_lea.vmem %s353_s29, 128  ;;  %p565_p5 = scmp.lt.s32.totalorder %s353_s29, %s353_s29 }
  0x4e   :  { %438 = vmatprep.subr.bf16.mxu0 %v596_v0  ;;  %443 = vmatpush3.bf16.msra.mxu1 %v442_v12  ;;  %v173_v19 = vld [vmem:[#allocation7 + $0x38] sm:$0xff]  ;;  %v257_v22 = vld [vmem:[#allocation8 + $0x8] sm:$0xff]  ;;  %v258_v23 = vld [vmem:[#allocation8 + $0x10] sm:$0xff]  ;;  %p561_p4 = scmp.ne.s32.totalorder %s353_s29, %s560_s30  ;;  %p566_p6 = scmp.lt.s32.totalorder %s560_s30, %s560_s30 }
  0x4f   :  { %444 = vmatprep.subr.bf16.mxu1 %v596_v0  ;;  %v451_v20 = vpack.c.bf16 %v173_v19, %v172_v18  ;;  %v454_v24 = vpack.c.bf16 %v257_v22, %v256_v21  ;;  %v259_v25 = vld [vmem:[#allocation8 + $0x18] sm:$0xff]  ;;  %v260_v32 = vld [vmem:[#allocation8 + $0x20] sm:$0xff]  ;;  %v261_v33 = vld [vmem:[#allocation8 + $0x28] sm:$0xff] }
  0x50   :  { %v457_v26 = vpack.c.bf16 %v259_v25, %v258_v23  ;;  %v363_v27 = vld [vmem:[%s723_s2] ss:$0 sm:$0xff]  ;;  %v460_v34 = vpack.c.bf16 %v261_v33, %v260_v32  ;;  %p567_p7 = por %p566_p6, %p565_p5 }
  0x51   :  { %440 = vmatpush3.bf16.msra.mxu0 %v439_v11  ;;  %v365_v35 = vld [vmem:[%s725_s4] ss:$0 sm:$0xff] }
  0x52   :  { %453 = vmatprep.subr.bf16.mxu0 %v596_v0  ;;  %446 = vmatpush3.bf16.msra.mxu1 %v445_v13  ;;  %v367_v40 = vld [vmem:[%s727_s6] ss:$0 sm:$0xff]  ;;  %p568_p8 = pnand %p567_p7, %p561_p4 }
  0x53   :  { %447 = vmatprep.subr.bf16.mxu1 %v596_v0 }
  0x54   :  { %399 = vmatmul.mubr.msk.f32.vlgmr.msra.gmra.mrb[0].mxu0 %vm92_vm1, %v80_v16 }
  0x55   :  { %432 = vmatprep.mubr.msk.f32.mxu0 %vm597_vm0, %v598_v1  ;;  %455 = vmatpush3.bf16.msra.mxu0 %v454_v24 }
  0x56   :  { %449 = vmatpush3.bf16.msra.mxu1 %v448_v17  ;;  %456 = vmatprep.subr.bf16.mxu0 %v596_v0 }
  0x57   :  { %450 = vmatprep.subr.bf16.mxu1 %v596_v0 }
  0x59   :  { %458 = vmatpush3.bf16.msra.mxu0 %v457_v26 }
  0x5a   :  { %452 = vmatpush3.bf16.msra.mxu1 %v451_v20  ;;  %459 = vmatprep.subr.bf16.mxu0 %v596_v0 }
  0x5d   :  { %461 = vmatpush3.bf16.msra.mxu0 %v460_v34 }
 0x127   :  { %v162_v28 = vpop.f32.mrb[0].mxu0 }
 0x128   :  { %v163_v29 = vadd.f32 %v363_v27, %v162_v28  ;;  %v400_v30 = vpop.f32.mrb[1].mxu0 }
 0x12a   :  { %v175_v31 = vmax.f32 %v163_v29, 0.0 }
 0x12c   :  { %418 = vmatmul.mubr.msk.f32.vlgmr.msra.gmra.mrb[0].mxu1 %vm182_vm2, %v175_v31 }
 0x1ff   :  { %v252_v36 = vpop.f32.mrb[0].mxu1 }
 0x200   :  { %v253_v37 = vadd.f32 %v365_v35, %v252_v36  ;;  %v419_v38 = vpop.f32.mrb[1].mxu1 }
 0x202   :  { %v263_v39 = vmax.f32 %v253_v37, 0.0 }
 0x204   :  { %433 = vmatmul.mubr.msk.f32.vlgmr.msra.gmra.mrb[2].mxu0 %vm270_vm3, %v263_v39 }
 0x2d7   :  { %v340_v41 = vpop.f32.mrb[2].mxu0 }
 0x2d8   :  { %v341_v42 = vadd.f32 %v367_v40, %v340_v41  ;;  %v434_v43 = vpop.f32.mrb[3].mxu0 }
 0x2da   :  { %345 = vst.msk [vmem:[#allocation10] sm:$0xff] %vm344_vm4, %v341_v42 }
 0x2db   :  { %571 = shalt.err (!%p568_p8)
}
 0x2dc   :  { %s572_s9 = scalar_lea.hbm %s728_s7, 128 }
 0x2dd   :  { %p573_p9 = scmp.ne.s32.totalorder %s728_s7, %s572_s9  ;;  %p576_p10 = scmp.lt.u32.totalorder %s572_s9, %s728_s7 }
 0x2df   :  { %p578_p11 = pnand %p576_p10, %p573_p9 }
 0x2e1   :  { %581 = shalt.err (!%p578_p11)
}
 0x2e2   :  { %355 = dma.vmem_to_hbm [thread:$0]  %s353_s29, 128, %s728_s7, [#allocation4]  }
 0x2e3   :  { %588 = dma.done.wait [#allocation4], 128  }
 0x2e4   :  { %589 = vsyncadd [#allocation4], 4294967168 }
 0x2e5   :  { %359 = vsyncpa [#allocation3], 1 }
 0x2e6   :  { %360 = vsyncpa [#allocation6], 1 }
 0x2e7   :  { %361 = vsyncpa [#allocation9], 1 }
 0x2e8   :  { %362 = vsyncpa [#allocation4], 1 }

</bundles_post_ra>
